<compile_context>
chip_gen: v7x
topology: tpu7x:2x2x1
jax: 0.10.0
libtpu: 0.0.40
codegen_flags: <defaults>
</compile_context>

<pallas_src>
import jax
import jax.numpy as jnp
from jax.experimental import pallas as pl
from jax.experimental.pallas import tpu as pltpu

# ----- synthetic config (config['n_*'] in the original repo, MovieLens-1M) -----
N_GENDER = 2
N_AGE = 7
N_OCCUPATION = 21
EMB_DIM = 32

_K_TOTAL = N_GENDER + N_AGE + N_OCCUPATION   # 30
_K_PAD = 32                                  # sublane-aligned fused reduction dim
_OUT_DIM = 3 * EMB_DIM                       # 96


def _round_up(x, m):
    return (x + m - 1) // m * m


def _ml_user_kernel(idx_ref, w_ref, out_ref):
    """idx_ref: [3, TILE_B]   int32  (rows: gender, age, occupation indices,
                                      batch lane-dense)
       w_ref:   [K_PAD, 3*D]  f32    block-diagonal fused embedding table
       out_ref: [TILE_B, 3*D] f32
    """
    k_pad = w_ref.shape[0]
    tile_b = out_ref.shape[0]

    # Fused one-hot built TRANSPOSED (K on sublanes, batch on lanes) so the
    # lane-dense index rows can be used directly -- no relayout of the index
    # data, just iota/compare filler on the VPU.  Fields occupy disjoint
    # sublane ranges of the fused K axis, so a simple OR of three compares
    # gives the block-diagonal selector.
    krow = jax.lax.broadcasted_iota(jnp.int32, (k_pad, tile_b), 0)
    g = idx_ref[0:1, :]                                   # [1, TILE_B]
    a = idx_ref[1:2, :] + N_GENDER
    o = idx_ref[2:3, :] + (N_GENDER + N_AGE)
    onehot_t = ((krow == g) | (krow == a) | (krow == o)).astype(jnp.float32)

    # One small, tile-aligned XLU transpose (only K_PAD=32 sublanes of data),
    # then a single MXU pass; the result is already the concatenated
    # [gender|age|occ] slab -> one store per tile, no concatenate.
    onehot = jnp.transpose(onehot_t)                      # [TILE_B, K_PAD]
    out_ref[...] = jnp.dot(onehot, w_ref[...],
                           preferred_element_type=jnp.float32)


def make_fused_table(w_gender, w_age, w_occupation):
    """Assemble the block-diagonal fused embedding table [K_PAD, 3*D].

    Build this ONCE (e.g. at module init) and pass it to every call of
    ml_user_loading -- the assembly is hoisted out of the per-call path.
    """
    d = w_gender.shape[1]
    assert w_gender.shape == (N_GENDER, d)
    assert w_age.shape == (N_AGE, d)
    assert w_occupation.shape == (N_OCCUPATION, d)
    w = jnp.zeros((_K_PAD, 3 * d), jnp.float32)
    w = w.at[0:N_GENDER, 0:d].set(w_gender.astype(jnp.float32))
    w = w.at[N_GENDER:N_GENDER + N_AGE, d:2 * d].set(w_age.astype(jnp.float32))
    w = w.at[N_GENDER + N_AGE:_K_TOTAL, 2 * d:3 * d].set(
        w_occupation.astype(jnp.float32))
    return w


def ml_user_loading(x1, w_blk, *, tile_b=2048):
    """x1: [B, 3] integer indices.  w_blk: output of make_fused_table.
    Returns [B, 3*D] float32 (same layout as the PyTorch forward)."""
    B = x1.shape[0]
    assert x1.shape[1] == 3
    k_pad, out_dim = w_blk.shape

    # Lane-dense index stream: [3, B] (batch on the lane axis).  This keeps
    # the per-tile index DMA/VMEM at ~12 B/row instead of a 128-lane-padded
    # [tile_b, 3] block.  (For peak perf, callers can store x1 transposed and
    # skip this tiny relayout of the 12 B/row index array.)
    x1_t = jnp.transpose(x1.astype(jnp.int32))            # [3, B]

    # Tile selection:
    #   * B <= 128: single tile, block dims == full array dims (any B legal).
    #   * else: tile_b is a multiple of 128 (lane alignment of the [3, tile_b]
    #     index block), clamped so the grid has >= 2 steps when possible
    #     (v7x: both TensorCores share the "parallel" batch axis) and capped
    #     at 4096 (per-step VMEM ~a few MiB, under v5e's 16 MiB scoped VMEM).
    #   The last block may be ragged; Pallas masks its writeback, so no
    #   host-side pad of x1 and no out[:B] slice pass over the output.
    if B <= 128:
        tile_b = B
    else:
        tile_b = max(128, min(int(tile_b), 4096))
        tile_b = min(tile_b, _round_up(pl.cdiv(B, 2), 128))
        tile_b = _round_up(tile_b, 128)
    grid = (pl.cdiv(B, tile_b),)

    return pl.pallas_call(
        _ml_user_kernel,
        out_shape=jax.ShapeDtypeStruct((B, out_dim), jnp.float32),
        grid=grid,
        in_specs=[
            # Per-tile integer indices (the only input stream scaling with B).
            pl.BlockSpec((3, tile_b), lambda i: (0, i)),
            # Fused weight table: resident in VMEM across all grid steps.
            pl.BlockSpec((k_pad, out_dim), lambda i: (0, 0)),
        ],
        # NOTE: 3*D = 96 < 128 lanes -> stores are lane-masked; kept as-is to
        # preserve the [B, 3*D] calling contract (a padded/transposed slab
        # would need a trailing copy that costs more than it saves).
        out_specs=pl.BlockSpec((tile_b, out_dim), lambda i: (i, 0)),
        compiler_params=pltpu.CompilerParams(
            dimension_semantics=("parallel",)),
    )(x1_t, w_blk)


def _reference(x1, w_gender, w_age, w_occupation):
    gender_emb = w_gender[x1[:, 0]]
    age_emb = w_age[x1[:, 1]]
    occ_emb = w_occupation[x1[:, 2]]
    return jnp.concatenate([gender_emb, age_emb, occ_emb], axis=1)


def _make_x1(key, batch):
    k1, k2, k3 = jax.random.split(key, 3)
    return jnp.concatenate(
        [jax.random.randint(k1, (batch, 1), 0, N_GENDER, jnp.int32),
         jax.random.randint(k2, (batch, 1), 0, N_AGE, jnp.int32),
         jax.random.randint(k3, (batch, 1), 0, N_OCCUPATION, jnp.int32)],
        axis=1)


if __name__ == "__main__":
    key = jax.random.PRNGKey(0)
    k_g, k_a, k_o, k_x1, k_x2 = jax.random.split(key, 5)

    # Embedding tables ~ N(0, 1), matching torch.nn.Embedding default init.
    w_gender = jax.random.normal(k_g, (N_GENDER, EMB_DIM), jnp.float32)
    w_age = jax.random.normal(k_a, (N_AGE, EMB_DIM), jnp.float32)
    w_occupation = jax.random.normal(k_o, (N_OCCUPATION, EMB_DIM), jnp.float32)

    # Fused block-diagonal table: built once, reused across calls (hoisted).
    w_blk = make_fused_table(w_gender, w_age, w_occupation)

    # Case 1: tiny batch, single tile (B = 8).
    x1_small = _make_x1(k_x1, 8)
    out_small = jax.block_until_ready(ml_user_loading(x1_small, w_blk))
    ref_small = _reference(x1_small, w_gender, w_age, w_occupation)
    assert out_small.shape == (8, 3 * EMB_DIM), out_small.shape
    assert jnp.allclose(out_small, ref_small, atol=1e-6, rtol=1e-6), \
        "single-tile mismatch vs gather reference"

    # Case 2: multi-tile grid with a ragged last block (no host pad / slice).
    x1_big = _make_x1(k_x2, 200)
    out_big = jax.block_until_ready(ml_user_loading(x1_big, w_blk, tile_b=128))
    ref_big = _reference(x1_big, w_gender, w_age, w_occupation)
    assert out_big.shape == (200, 3 * EMB_DIM), out_big.shape
    assert jnp.allclose(out_big, ref_big, atol=1e-6, rtol=1e-6), \
        "multi-tile / ragged-tail mismatch vs gather reference"

    print("KERNEL_OK")
</pallas_src>

<mosaic_0001>
module attributes {stable_mosaic.version = 11 : i64} {
  func.func @_ml_user_kernel(%arg0: i32, %arg1: memref<3x8xi32, #tpu.memory_space<vmem>>, %arg2: memref<32x96xf32, #tpu.memory_space<vmem>>, %arg3: memref<8x96xf32, #tpu.memory_space<vmem>>) attributes {dimension_semantics = [#tpu.dimension_semantics<parallel>], iteration_bounds = array<i64: 1>, scalar_prefetch = 0 : i64, scratch_operands = 0 : i64, tpu.core_type = #tpu.core_type<tc>, window_params = [{transform_indices = @transform_0, window_bounds = array<i64: 3, 8>}, {pipeline_mode = #tpu.pipeline_mode<synchronous>, transform_indices = @transform_1, window_bounds = array<i64: 32, 96>}, {transform_indices = @transform_2, window_bounds = array<i64: 8, 96>}]} {
    %0 = tpu.iota {dimensions = array<i32: 0>} : vector<32x8xi32>
    %c0 = arith.constant 0 : index
    %c0_0 = arith.constant 0 : index
    %1 = vector.load %arg1[%c0, %c0_0] : memref<3x8xi32, #tpu.memory_space<vmem>>, vector<1x8xi32>
    %c1 = arith.constant 1 : index
    %c0_1 = arith.constant 0 : index
    %2 = vector.load %arg1[%c1, %c0_1] : memref<3x8xi32, #tpu.memory_space<vmem>>, vector<1x8xi32>
    %c2_i32 = arith.constant 2 : i32
    %3 = vector.broadcast %c2_i32 : i32 to vector<1x8xi32>
    %4 = arith.addi %2, %3 : vector<1x8xi32>
    %c2 = arith.constant 2 : index
    %c0_2 = arith.constant 0 : index
    %5 = vector.load %arg1[%c2, %c0_2] : memref<3x8xi32, #tpu.memory_space<vmem>>, vector<1x8xi32>
    %c9_i32 = arith.constant 9 : i32
    %6 = vector.broadcast %c9_i32 : i32 to vector<1x8xi32>
    %7 = arith.addi %5, %6 : vector<1x8xi32>
    %8 = vector.broadcast %1 : vector<1x8xi32> to vector<32x8xi32>
    %9 = arith.cmpi eq, %0, %8 : vector<32x8xi32>
    %10 = vector.broadcast %4 : vector<1x8xi32> to vector<32x8xi32>
    %11 = arith.cmpi eq, %0, %10 : vector<32x8xi32>
    %12 = arith.ori %9, %11 : vector<32x8xi1>
    %13 = vector.broadcast %7 : vector<1x8xi32> to vector<32x8xi32>
    %14 = arith.cmpi eq, %0, %13 : vector<32x8xi32>
    %15 = arith.ori %12, %14 : vector<32x8xi1>
    %16 = arith.extui %15 : vector<32x8xi1> to vector<32x8xi32>
    %17 = arith.sitofp %16 : vector<32x8xi32> to vector<32x8xf32>
    %18 = tpu.transpose %17, [1, 0] : vector<32x8xf32> -> vector<8x32xf32>
    %c0_3 = arith.constant 0 : index
    %c0_4 = arith.constant 0 : index
    %19 = vector.load %arg2[%c0_3, %c0_4] : memref<32x96xf32, #tpu.memory_space<vmem>>, vector<32x96xf32>
    %cst = arith.constant dense<0.000000e+00> : vector<8x96xf32>
    %20 = tpu.matmul %18, %19, %cst {dimension_numbers = #tpu.dot_dimension_numbers<[1], [0], [0], [1], [0, 0, 1, 1], [], []>} : vector<8x32xf32>, vector<32x96xf32>, vector<8x96xf32> -> vector<8x96xf32>
    %c0_5 = arith.constant 0 : index
    %c0_6 = arith.constant 0 : index
    %21 = vector.load %arg3[%c0_5, %c0_6] : memref<8x96xf32, #tpu.memory_space<vmem>>, vector<8x96xf32>
    tpu.vector_store %arg3[%c0_5, %c0_6], %20 {strides = array<i32>} : memref<8x96xf32, #tpu.memory_space<vmem>>, vector<8x96xf32>,
    return
  }
  func.func @transform_0(%arg0: i32) -> (i32, i32) {
    %c0_i32 = arith.constant 0 : i32
    %c0_i32_0 = arith.constant 0 : i32
    return %c0_i32, %arg0 : i32, i32
  }
  func.func @transform_1(%arg0: i32) -> (i32, i32) {
    %c0_i32 = arith.constant 0 : i32
    %c0_i32_0 = arith.constant 0 : i32
    %c0_i32_1 = arith.constant 0 : i32
    return %c0_i32, %c0_i32_0 : i32, i32
  }
  func.func @transform_2(%arg0: i32) -> (i32, i32) {
    %c0_i32 = arith.constant 0 : i32
    %c0_i32_0 = arith.constant 0 : i32
    return %arg0, %c0_i32 : i32, i32
  }
}

</mosaic_0001>

<bundles_post_ra>
// kernel: tpu_custom_call.1
= control target key start
LH: loop header
LB: loop body
LE: loop exit
PB: predicated region body
PF: predicated region fallthrough
CT: control target
= control target key end

     0   :  { %7 = vsyncpa [#allocation3], 0  ;;  %s390_s0 = inlined_call_operand.hbm [shape: s32[3,8], index: 0, kind: input, shape index: {}]   ;;  %s391_s1 = inlined_call_operand.hbm [shape: f32[32,96], index: 1, kind: input, shape index: {}]   ;;  %s392_s2 = inlined_call_operand.hbm [shape: f32[8,96], index: 2, kind: output, shape index: {}]  }
   0x1   :  { %8 = vsyncpa [#allocation6], 0 }
   0x2   :  { %9 = vsyncpa [#allocation4], 0  ;;  %s324_s9 = smov [#allocation2]   ;;  %s325_s11 = smov [#allocation5]  }
   0x3   :  { %s16_s10 = sshll.u32 %s324_s9, 4  ;;  %s25_s12 = sshll.u32 %s325_s11, 4  ;;  %s17_s10 = int_to_ptr.vmem [resolvable:$true] %s16_s10  ;;  %s347_s12 = int_to_ptr.vmem [resolvable:$true] %s25_s12 }
   0x4   :  { %s252_s15 = scalar_lea.hbm %s390_s0, 64 }
   0x5   :  { %p253_p0 = scmp.ne.s32.totalorder %s390_s0, %s252_s15  ;;  %p256_p1 = scmp.lt.u32.totalorder %s252_s15, %s390_s0 }
   0x7   :  { %p258_p2 = pnand %p256_p1, %p253_p0 }
   0x9   :  { %261 = shalt.err (!%p258_p2)
}
   0xa   :  { %s262_s20 = scalar_lea.vmem %s17_s10, 64  ;;  %p267_p4 = scmp.lt.s32.totalorder %s17_s10, %s17_s10 }
   0xb   :  { %p263_p3 = scmp.ne.s32.totalorder %s17_s10, %s262_s20  ;;  %p268_p5 = scmp.lt.s32.totalorder %s262_s20, %s262_s20 }
   0xd   :  { %p269_p6 = por %p268_p5, %p267_p4 }
   0xf   :  { %p270_p7 = pnand %p269_p6, %p263_p3 }
  0x11   :  { %273 = shalt.err (!%p270_p7)
}
  0x12   :  { %19 = dma.hbm_to_vmem [thread:$0]  %s390_s0, 64, %s17_s10, [#allocation3]  }
  0x13   :  { %s274_s25 = scalar_lea.hbm %s391_s1, 512 }
  0x14   :  { %p275_p8 = scmp.ne.s32.totalorder %s391_s1, %s274_s25  ;;  %p278_p9 = scmp.lt.u32.totalorder %s274_s25, %s391_s1 }
  0x16   :  { %p280_p10 = pnand %p278_p9, %p275_p8 }
  0x18   :  { %283 = shalt.err (!%p280_p10)
}
  0x19   :  { %s284_s30 = scalar_lea.vmem %s347_s12, 512  ;;  %p289_p12 = scmp.lt.s32.totalorder %s347_s12, %s347_s12 }
  0x1a   :  { %p285_p11 = scmp.ne.s32.totalorder %s347_s12, %s284_s30  ;;  %p290_p13 = scmp.lt.s32.totalorder %s284_s30, %s284_s30 }
  0x1c   :  { %p291_p0 = por %p290_p13, %p289_p12 }
  0x1e   :  { %p292_p1 = pnand %p291_p0, %p285_p11 }
  0x20   :  { %295 = shalt.err (!%p292_p1)
}
  0x21   :  { %s326_s0 = smov 128   ;;  %s327_s3 = smov 8  }
  0x22   :  { %31 = dma.hbm_to_vmem [thread:$0]  %s391_s1, 512, %s347_s12, [#allocation6], %s326_s0, %s326_s0, %s327_s3  }
  0x23   :  { %318 = dma.done.wait [#allocation3], 64  }
  0x24   :  { %319 = vsyncadd [#allocation3], 4294967232 }
  0x25   :  { %320 = dma.done.wait [#allocation6], 512  }
  0x26   :  { %321 = vsyncadd [#allocation6], 4294966784  ;;  %v38_v0 = vlaneseq  ;;  %v328_v1 = vmov 0.0|0.0   ;;  %vm329_vm0 = vmmov 0   ;;  %v330_v2 = vmov 0.0   ;;  %v120_v11 = vld [vmem:[#allocation5] sm:$0xff] }
  0x27   :  { %238 = vmatprep.subr.bf16.mxu0 %v328_v1  ;;  %235 = vmatprep.mubr.msk.f32.mxu0 %vm329_vm0, %v330_v2  ;;  %v216_v5 = vld [vmem:[#allocation2] ss:$0 sm:$0xff]  ;;  %v44_v6 = vld [vmem:[#allocation2 + $0x1] sm:$0x1]  ;;  %v46_v7 = vld [vmem:[#allocation2 + $0x2] sm:$0x1] }
  0x28   :  { %v39_v3 = vshrl.u32 %v38_v0, 7  ;;  %v45_v8 = vadd.s32 2, %v44_v6  ;;  %v47_v9 = vadd.s32 9, %v46_v7  ;;  %v121_v12 = vld [vmem:[#allocation5 + $0x8] sm:$0xff]  ;;  %v122_v13 = vld [vmem:[#allocation5 + $0x10] sm:$0xff]  ;;  %v123_v15 = vld [vmem:[#allocation5 + $0x18] sm:$0xff] }
  0x29   :  { %v239_v14 = vpack.c.bf16 %v121_v12, %v120_v11  ;;  %v242_v20 = vpack.c.bf16 %v123_v15, %v122_v13  ;;  %s331_s1 = smov [#allocation7]  }
  0x2a   :  { %v58_v4 = vsub.s32 0, %v39_v3  ;;  %v40_v10 = vadd.s32 8, %v39_v3  ;;  %vm52_vm1 = vcmp.eq.s32.totalorder %v39_v3, %v216_v5  ;;  %v41_v18 = vadd.s32 16, %v39_v3  ;;  %s206_s6 = sshll.u32 %s331_s1, 4  ;;  %s207_s6 = int_to_ptr.vmem [resolvable:$true] %s206_s6 }
  0x2b   :  { %v42_v19 = vadd.s32 24, %v39_v3  ;;  %240 = vmatpush3.bf16.msra.mxu0 %v239_v14  ;;  %s296_s7 = scalar_lea.vmem %s207_s6, 128  ;;  %p301_p3 = scmp.lt.s32.totalorder %s207_s6, %s207_s6 }
  0x2c   :  { %v59_v16 = vrot.slane %v45_v8, %v58_v4  ;;  %v71_v17 = vrot.slane %v47_v9, %v58_v4  ;;  %vm53_vm4 = vcmp.eq.s32.totalorder %v40_v10, %v216_v5  ;;  %241 = vmatprep.subr.bf16.mxu0 %v328_v1  ;;  %vm54_vm9 = vcmp.eq.s32.totalorder %v41_v18, %v216_v5  ;;  %p297_p2 = scmp.ne.s32.totalorder %s207_s6, %s296_s7  ;;  %p302_p4 = scmp.lt.s32.totalorder %s296_s7, %s296_s7 }
  0x2d   :  { %vm55_vm14 = vcmp.eq.s32.totalorder %v42_v19, %v216_v5 }
  0x2e   :  { %vm60_vm2 = vcmp.eq.s32.totalorder %v39_v3, %v59_v16  ;;  %vm72_vm3 = vcmp.eq.s32.totalorder %v39_v3, %v71_v17  ;;  %vm61_vm5 = vcmp.eq.s32.totalorder %v40_v10, %v59_v16  ;;  %vm73_vm7 = vcmp.eq.s32.totalorder %v40_v10, %v71_v17  ;;  %p303_p5 = por %p302_p4, %p301_p3 }
  0x2f   :  { %vm64_vm6 = vmor %vm52_vm1, %vm60_vm2  ;;  %vm62_vm10 = vcmp.eq.s32.totalorder %v41_v18, %v59_v16  ;;  %vm74_vm12 = vcmp.eq.s32.totalorder %v41_v18, %v71_v17  ;;  %243 = vmatpush3.bf16.msra.mxu0 %v242_v20  ;;  %vm63_vm15 = vcmp.eq.s32.totalorder %v42_v19, %v59_v16 }
  0x30   :  { %vm76_vm8 = vmor %vm64_vm6, %vm72_vm3  ;;  %vm75_vm3 = vcmp.eq.s32.totalorder %v42_v19, %v71_v17  ;;  %p304_p6 = pnand %p303_p5, %p297_p2 }
  0x31   :  { %v217_v21 = vsel %vm76_vm8, 1.0, %v330_v2  ;;  %vm65_vm11 = vmor %vm53_vm4, %vm61_vm5  ;;  %vm124_vm8 = vcmask 261120   ;;  %vm198_vm4 = vcmask 785408  }
  0x32   :  { %88 = vxpose.xlu0.b32.start [1/4] (short) (narrow) %v217_v21, 8  ;;  %vm77_vm13 = vmor %vm65_vm11, %vm73_vm7 }
  0x33   :  { %v218_v22 = vsel %vm77_vm13, 1.0, %v330_v2  ;;  %vm66_vm0 = vmor %vm54_vm9, %vm62_vm10 }
  0x34   :  { %vm78_vm1 = vmor %vm66_vm0, %vm74_vm12 }
  0x35   :  { %vm67_vm2 = vmor %vm55_vm14, %vm63_vm15  ;;  %v219_v23 = vsel %vm78_vm1, 1.0, %v330_v2 }
  0x36   :  { %89 = vxpose.xlu0.b32.cont [2/4] (short) (narrow) %v218_v22, 8  ;;  %vm79_vm6 = vmor %vm67_vm2, %vm75_vm3 }
  0x37   :  { %v220_v24 = vsel %vm79_vm6, 1.0, %v330_v2 }
  0x3a   :  { %90 = vxpose.xlu0.b32.cont [3/4] (short) (narrow) %v219_v23, 8 }
  0x3e   :  { %91 = vxpose.xlu0.b32.end [4/4] (short) (narrow) %v220_v24, 8 }
  0xb2   :  { %v104_v25 = vpop.trf.xlu0 }
  0xb3   :  { %236 = vmatmul.mubr.msk.f32.vlgmr.msra.gmra.mrb[0].mxu0 %vm124_vm8, %v104_v25 }
 0x186   :  { %v194_v26 = vpop.f32.mrb[0].mxu0 }
 0x187   :  { %v237_v27 = vpop.f32.mrb[1].mxu0  ;;  %199 = vst.msk [vmem:[#allocation7] sm:$0xff] %vm198_vm4, %v194_v26 }
 0x188   :  { %307 = shalt.err (!%p304_p6)
}
 0x189   :  { %s308_s10 = scalar_lea.hbm %s392_s2, 128 }
 0x18a   :  { %p309_p7 = scmp.ne.s32.totalorder %s392_s2, %s308_s10  ;;  %p312_p8 = scmp.lt.u32.totalorder %s308_s10, %s392_s2 }
 0x18c   :  { %p314_p9 = pnand %p312_p8, %p309_p7 }
 0x18e   :  { %317 = shalt.err (!%p314_p9)
}
 0x18f   :  { %209 = dma.vmem_to_hbm [thread:$0]  %s207_s6, 128, %s392_s2, [#allocation4]  }
 0x190   :  { %322 = dma.done.wait [#allocation4], 128  }
 0x191   :  { %323 = vsyncadd [#allocation4], 4294967168 }
 0x192   :  { %213 = vsyncpa [#allocation3], 1 }
 0x193   :  { %214 = vsyncpa [#allocation6], 1 }
 0x194   :  { %215 = vsyncpa [#allocation4], 1 }

</bundles_post_ra>
